<compile_context>
chip_gen: v7x
topology: tpu7x:2x2x1
jax: 0.10.0
libtpu: 0.0.40
codegen_flags: <defaults>
</compile_context>

<pallas_src>
import functools

import jax
import jax.numpy as jnp
from jax.experimental import pallas as pl
from jax.experimental.pallas import tpu as pltpu

LANES = 128
BLK_M_MAX = 2048  # rows per grid step -> 1 MiB/input tile (f32), 4 MiB double-buffered


def _dice_kernel(pred_ref, true_ref, out_ref, acc_pt, acc_t, acc_p, *, n, blk_m):
    # pred_ref / true_ref: (blk_m, 128) tiles (native dtype) in VMEM
    # out_ref: (1, 1) f32 scalar result in SMEM
    # acc_*: (8, 128) f32 VMEM vector accumulators (persist across grid steps)
    i = pl.program_id(0)

    @pl.when(i == 0)
    def _init():
        acc_pt[...] = jnp.zeros_like(acc_pt)
        acc_t[...] = jnp.zeros_like(acc_t)
        acc_p[...] = jnp.zeros_like(acc_p)

    # Mask out lane-padding / out-of-bounds rows of the (possibly partial)
    # last block. rem = elements remaining starting at this block.
    rem = n - i * (blk_m * LANES)
    row_ids = jax.lax.broadcasted_iota(jnp.int32, (blk_m, LANES), 0)
    lane_ids = jax.lax.broadcasted_iota(jnp.int32, (blk_m, LANES), 1)
    local_idx = row_ids * LANES + lane_ids
    mask = local_idx < rem

    p = jnp.where(mask, jax.nn.sigmoid(pred_ref[...].astype(jnp.float32)), 0.0)
    t = jnp.where(mask, true_ref[...].astype(jnp.float32), 0.0)

    # Vreg-aligned fold: (blk_m, 128) -> (blk_m//8, 8, 128) -> sum axis 0.
    # Pure VPU adds; no cross-lane (XLU) work per step.
    def fold(x):
        return jnp.sum(x.reshape(blk_m // 8, 8, LANES), axis=0)

    acc_pt[...] += fold(p * t)
    acc_t[...] += fold(t)
    acc_p[...] += fold(p)

    @pl.when(i == pl.num_programs(0) - 1)
    def _finalize():
        inter = jnp.sum(acc_pt[...])
        s_t = jnp.sum(acc_t[...])
        s_p = jnp.sum(acc_p[...])
        smooth = jnp.float32(1.0)
        score = (2.0 * inter + smooth) / (s_t + s_p + smooth)
        out_ref[0, 0] = jnp.float32(1.0) - score


def dice_loss(y_pred, y_true):
    """Dice loss matching PyTorch DiceLoss.forward (global reduction)."""
    assert y_pred.shape == y_true.shape
    n = int(y_pred.size)

    pred_flat = y_pred.reshape(-1)
    true_flat = y_true.reshape(-1)

    # Fast path: numel % 128 == 0 -> pure reshape (no copy). Otherwise a
    # minimal pad to a lane multiple; pad values are irrelevant (masked
    # in-kernel), so zeros are fine and no -1e9 trick is needed.
    if n % LANES != 0:
        pad = LANES - (n % LANES)
        pred_flat = jnp.pad(pred_flat, (0, pad))
        true_flat = jnp.pad(true_flat, (0, pad))
    m = pred_flat.size // LANES

    pred2d = pred_flat.reshape(m, LANES)
    true2d = true_flat.reshape(m, LANES)

    # Block rows: multiple of 8 (sublane), capped for VMEM / pipelining.
    blk_m = min(BLK_M_MAX, ((m + 7) // 8) * 8)
    num_blocks = pl.cdiv(m, blk_m)

    kernel = functools.partial(_dice_kernel, n=n, blk_m=blk_m)

    out = pl.pallas_call(
        kernel,
        out_shape=jax.ShapeDtypeStruct((1, 1), jnp.float32),
        grid_spec=pltpu.PrefetchScalarGridSpec(
            num_scalar_prefetch=0,
            grid=(num_blocks,),
            in_specs=[
                pl.BlockSpec((blk_m, LANES), lambda i: (i, 0)),
                pl.BlockSpec((blk_m, LANES), lambda i: (i, 0)),
            ],
            out_specs=pl.BlockSpec(
                (1, 1), lambda i: (0, 0), memory_space=pltpu.MemorySpace.SMEM
            ),
            scratch_shapes=[
                pltpu.VMEM((8, LANES), jnp.float32),  # sum(p * t)
                pltpu.VMEM((8, LANES), jnp.float32),  # sum(t)
                pltpu.VMEM((8, LANES), jnp.float32),  # sum(p)
            ],
        ),
        compiler_params=pltpu.CompilerParams(
            dimension_semantics=("arbitrary",),  # reduction axis
        ),
    )(pred2d, true2d)
    return out[0, 0]


def _dice_loss_ref(y_pred, y_true):
    p = jax.nn.sigmoid(y_pred.astype(jnp.float32))
    t = y_true.astype(jnp.float32)
    smooth = 1.0
    score = (2.0 * jnp.sum(t * p) + smooth) / (jnp.sum(t) + jnp.sum(p) + smooth)
    return 1.0 - score


if __name__ == "__main__":
    key = jax.random.PRNGKey(0)
    k1, k2 = jax.random.split(key)
    # NCHW, like the PyTorch module's inputs
    y_pred = jax.random.normal(k1, (2, 4, 16, 16), dtype=jnp.float32)
    y_true = (jax.random.uniform(k2, (2, 4, 16, 16)) > 0.5).astype(jnp.float32)

    loss = jax.block_until_ready(dice_loss(y_pred, y_true))
    ref = _dice_loss_ref(y_pred, y_true)
    assert jnp.allclose(loss, ref, atol=1e-5, rtol=1e-5), (loss, ref)
    print("KERNEL_OK")
</pallas_src>

<mosaic_0001>
module attributes {stable_mosaic.version = 11 : i64} {
  func.func @_dice_kernel(%arg0: i32, %arg1: memref<16x128xf32, #tpu.memory_space<vmem>>, %arg2: memref<16x128xf32, #tpu.memory_space<vmem>>, %arg3: memref<1x1xf32, #tpu.memory_space<smem>>, %arg4: memref<8x128xf32, #tpu.memory_space<vmem>>, %arg5: memref<8x128xf32, #tpu.memory_space<vmem>>, %arg6: memref<8x128xf32, #tpu.memory_space<vmem>>) attributes {dimension_semantics = [#tpu.dimension_semantics<arbitrary>], iteration_bounds = array<i64: 1>, scalar_prefetch = 0 : i64, scratch_operands = 3 : i64, tpu.core_type = #tpu.core_type<tc>, window_params = [{transform_indices = @transform_0, window_bounds = array<i64: 16, 128>}, {transform_indices = @transform_1, window_bounds = array<i64: 16, 128>}, {transform_indices = @transform_2, window_bounds = array<i64: 1, 1>}]} {
    %c0_i32 = arith.constant 0 : i32
    %0 = arith.cmpi eq, %arg0, %c0_i32 : i32
    %1 = arith.extui %0 : i1 to i32
    %c0_i32_0 = arith.constant 0 : i32
    %2 = arith.cmpi ne, %1, %c0_i32_0 : i32
    scf.if %2 {
      %cst_24 = arith.constant 0.000000e+00 : f32
      %42 = vector.broadcast %cst_24 : f32 to vector<8x128xf32>
      %c0_25 = arith.constant 0 : index
      %c0_26 = arith.constant 0 : index
      %43 = vector.load %arg4[%c0_25, %c0_26] : memref<8x128xf32, #tpu.memory_space<vmem>>, vector<8x128xf32>
      tpu.vector_store %arg4[%c0_25, %c0_26], %42 {strides = array<i32>} : memref<8x128xf32, #tpu.memory_space<vmem>>, vector<8x128xf32>,
      %cst_27 = arith.constant 0.000000e+00 : f32
      %44 = vector.broadcast %cst_27 : f32 to vector<8x128xf32>
      %c0_28 = arith.constant 0 : index
      %c0_29 = arith.constant 0 : index
      %45 = vector.load %arg5[%c0_28, %c0_29] : memref<8x128xf32, #tpu.memory_space<vmem>>, vector<8x128xf32>
      tpu.vector_store %arg5[%c0_28, %c0_29], %44 {strides = array<i32>} : memref<8x128xf32, #tpu.memory_space<vmem>>, vector<8x128xf32>,
      %cst_30 = arith.constant 0.000000e+00 : f32
      %46 = vector.broadcast %cst_30 : f32 to vector<8x128xf32>
      %c0_31 = arith.constant 0 : index
      %c0_32 = arith.constant 0 : index
      %47 = vector.load %arg6[%c0_31, %c0_32] : memref<8x128xf32, #tpu.memory_space<vmem>>, vector<8x128xf32>
      tpu.vector_store %arg6[%c0_31, %c0_32], %46 {strides = array<i32>} : memref<8x128xf32, #tpu.memory_space<vmem>>, vector<8x128xf32>,
    } else {
    }
    %c2048_i32 = arith.constant 2048 : i32
    %3 = arith.muli %arg0, %c2048_i32 : i32
    %c2048_i32_1 = arith.constant 2048 : i32
    %4 = arith.subi %c2048_i32_1, %3 : i32
    %5 = tpu.iota {dimensions = array<i32: 0>} : vector<16x128xi32>
    %6 = tpu.iota {dimensions = array<i32: 1>} : vector<16x128xi32>
    %c128_i32 = arith.constant 128 : i32
    %7 = vector.broadcast %c128_i32 : i32 to vector<16x128xi32>
    %8 = arith.muli %5, %7 : vector<16x128xi32>
    %9 = arith.addi %8, %6 : vector<16x128xi32>
    %10 = vector.broadcast %4 : i32 to vector<16x128xi32>
    %11 = arith.cmpi slt, %9, %10 : vector<16x128xi32>
    %c0 = arith.constant 0 : index
    %c0_2 = arith.constant 0 : index
    %12 = vector.load %arg1[%c0, %c0_2] : memref<16x128xf32, #tpu.memory_space<vmem>>, vector<16x128xf32>
    %13 = arith.negf %12 : vector<16x128xf32>
    %14 = math.exp %13 : vector<16x128xf32>
    %cst = arith.constant 1.000000e+00 : f32
    %15 = vector.broadcast %cst : f32 to vector<16x128xf32>
    %16 = arith.addf %15, %14 : vector<16x128xf32>
    %17 = arith.divf %15, %16 : vector<16x128xf32>
    %cst_3 = arith.constant 0.000000e+00 : f32
    %18 = vector.broadcast %cst_3 : f32 to vector<16x128xf32>
    %19 = arith.select %11, %17, %18 : vector<16x128xi1>, vector<16x128xf32>
    %c0_4 = arith.constant 0 : index
    %c0_5 = arith.constant 0 : index
    %20 = vector.load %arg2[%c0_4, %c0_5] : memref<16x128xf32, #tpu.memory_space<vmem>>, vector<16x128xf32>
    %cst_6 = arith.constant 0.000000e+00 : f32
    %21 = vector.broadcast %cst_6 : f32 to vector<16x128xf32>
    %22 = arith.select %11, %20, %21 : vector<16x128xi1>, vector<16x128xf32>
    %c0_7 = arith.constant 0 : index
    %c0_8 = arith.constant 0 : index
    %23 = vector.load %arg4[%c0_7, %c0_8] : memref<8x128xf32, #tpu.memory_space<vmem>>, vector<8x128xf32>
    %24 = arith.mulf %19, %22 : vector<16x128xf32>
    %25 = vector.shape_cast %24 : vector<16x128xf32> to vector<2x8x128xf32>
    %cst_9 = arith.constant dense<0.000000e+00> : vector<8x128xf32>
    %26 = vector.multi_reduction <add>, %25, %cst_9 [0] : vector<2x8x128xf32> to vector<8x128xf32>
    %27 = arith.addf %23, %26 : vector<8x128xf32>
    %c0_10 = arith.constant 0 : index
    %c0_11 = arith.constant 0 : index
    %28 = vector.load %arg4[%c0_10, %c0_11] : memref<8x128xf32, #tpu.memory_space<vmem>>, vector<8x128xf32>
    tpu.vector_store %arg4[%c0_10, %c0_11], %27 {strides = array<i32>} : memref<8x128xf32, #tpu.memory_space<vmem>>, vector<8x128xf32>,
    %c0_12 = arith.constant 0 : index
    %c0_13 = arith.constant 0 : index
    %29 = vector.load %arg5[%c0_12, %c0_13] : memref<8x128xf32, #tpu.memory_space<vmem>>, vector<8x128xf32>
    %30 = vector.shape_cast %22 : vector<16x128xf32> to vector<2x8x128xf32>
    %cst_14 = arith.constant dense<0.000000e+00> : vector<8x128xf32>
    %31 = vector.multi_reduction <add>, %30, %cst_14 [0] : vector<2x8x128xf32> to vector<8x128xf32>
    %32 = arith.addf %29, %31 : vector<8x128xf32>
    %c0_15 = arith.constant 0 : index
    %c0_16 = arith.constant 0 : index
    %33 = vector.load %arg5[%c0_15, %c0_16] : memref<8x128xf32, #tpu.memory_space<vmem>>, vector<8x128xf32>
    tpu.vector_store %arg5[%c0_15, %c0_16], %32 {strides = array<i32>} : memref<8x128xf32, #tpu.memory_space<vmem>>, vector<8x128xf32>,
    %c0_17 = arith.constant 0 : index
    %c0_18 = arith.constant 0 : index
    %34 = vector.load %arg6[%c0_17, %c0_18] : memref<8x128xf32, #tpu.memory_space<vmem>>, vector<8x128xf32>
    %35 = vector.shape_cast %19 : vector<16x128xf32> to vector<2x8x128xf32>
    %cst_19 = arith.constant dense<0.000000e+00> : vector<8x128xf32>
    %36 = vector.multi_reduction <add>, %35, %cst_19 [0] : vector<2x8x128xf32> to vector<8x128xf32>
    %37 = arith.addf %34, %36 : vector<8x128xf32>
    %c0_20 = arith.constant 0 : index
    %c0_21 = arith.constant 0 : index
    %38 = vector.load %arg6[%c0_20, %c0_21] : memref<8x128xf32, #tpu.memory_space<vmem>>, vector<8x128xf32>
    tpu.vector_store %arg6[%c0_20, %c0_21], %37 {strides = array<i32>} : memref<8x128xf32, #tpu.memory_space<vmem>>, vector<8x128xf32>,
    %c0_i32_22 = arith.constant 0 : i32
    %39 = arith.cmpi eq, %arg0, %c0_i32_22 : i32
    %40 = arith.extui %39 : i1 to i32
    %c0_i32_23 = arith.constant 0 : i32
    %41 = arith.cmpi ne, %40, %c0_i32_23 : i32
    scf.if %41 {
      %c0_24 = arith.constant 0 : index
      %c0_25 = arith.constant 0 : index
      %42 = vector.load %arg4[%c0_24, %c0_25] : memref<8x128xf32, #tpu.memory_space<vmem>>, vector<8x128xf32>
      %43 = vector.shape_cast %42 : vector<8x128xf32> to vector<1x8x128xf32>
      %cst_26 = arith.constant dense<0.000000e+00> : vector<1xf32>
      %44 = vector.multi_reduction <add>, %43, %cst_26 [1, 2] : vector<1x8x128xf32> to vector<1xf32>
      %45 = vector.shape_cast %44 : vector<1xf32> to vector<1x1x1xf32>
      %46 = vector.extract %45[0, 0, 0] : f32 from vector<1x1x1xf32>
      %c0_27 = arith.constant 0 : index
      %c0_28 = arith.constant 0 : index
      %47 = vector.load %arg5[%c0_27, %c0_28] : memref<8x128xf32, #tpu.memory_space<vmem>>, vector<8x128xf32>
      %48 = vector.shape_cast %47 : vector<8x128xf32> to vector<1x8x128xf32>
      %cst_29 = arith.constant dense<0.000000e+00> : vector<1xf32>
      %49 = vector.multi_reduction <add>, %48, %cst_29 [1, 2] : vector<1x8x128xf32> to vector<1xf32>
      %50 = vector.shape_cast %49 : vector<1xf32> to vector<1x1x1xf32>
      %51 = vector.extract %50[0, 0, 0] : f32 from vector<1x1x1xf32>
      %c0_30 = arith.constant 0 : index
      %c0_31 = arith.constant 0 : index
      %52 = vector.load %arg6[%c0_30, %c0_31] : memref<8x128xf32, #tpu.memory_space<vmem>>, vector<8x128xf32>
      %53 = vector.shape_cast %52 : vector<8x128xf32> to vector<1x8x128xf32>
      %cst_32 = arith.constant dense<0.000000e+00> : vector<1xf32>
      %54 = vector.multi_reduction <add>, %53, %cst_32 [1, 2] : vector<1x8x128xf32> to vector<1xf32>
      %55 = vector.shape_cast %54 : vector<1xf32> to vector<1x1x1xf32>
      %56 = vector.extract %55[0, 0, 0] : f32 from vector<1x1x1xf32>
      %cst_33 = arith.constant 2.000000e+00 : f32
      %57 = arith.mulf %cst_33, %46 : f32
      %cst_34 = arith.constant 1.000000e+00 : f32
      %58 = arith.addf %57, %cst_34 : f32
      %59 = arith.addf %51, %56 : f32
      %cst_35 = arith.constant 1.000000e+00 : f32
      %60 = arith.addf %59, %cst_35 : f32
      %61 = arith.divf %58, %60 : f32
      %cst_36 = arith.constant 1.000000e+00 : f32
      %62 = arith.subf %cst_36, %61 : f32
      %c0_37 = arith.constant 0 : index
      %c0_38 = arith.constant 0 : index
      %63 = memref.load %arg3[%c0_37, %c0_38] : memref<1x1xf32, #tpu.memory_space<smem>>
      memref.store %62, %arg3[%c0_37, %c0_38] : memref<1x1xf32, #tpu.memory_space<smem>>
    } else {
    }
    return
  }
  func.func @transform_0(%arg0: i32) -> (i32, i32) {
    %c0_i32 = arith.constant 0 : i32
    %c0_i32_0 = arith.constant 0 : i32
    return %arg0, %c0_i32 : i32, i32
  }
  func.func @transform_1(%arg0: i32) -> (i32, i32) {
    %c0_i32 = arith.constant 0 : i32
    %c0_i32_0 = arith.constant 0 : i32
    return %arg0, %c0_i32 : i32, i32
  }
  func.func @transform_2(%arg0: i32) -> (i32, i32) {
    %c0_i32 = arith.constant 0 : i32
    %c0_i32_0 = arith.constant 0 : i32
    %c0_i32_1 = arith.constant 0 : i32
    return %c0_i32, %c0_i32_0 : i32, i32
  }
}

</mosaic_0001>

<bundles_post_ra>
// kernel: tpu_custom_call.1
= control target key start
LH: loop header
LB: loop body
LE: loop exit
PB: predicated region body
PF: predicated region fallthrough
CT: control target
= control target key end

     0   :  { %7 = vsyncpa [#allocation6], 0  ;;  %s295_s0 = inlined_call_operand.hbm [shape: f32[16,128], index: 0, kind: input, shape index: {}]   ;;  %s296_s1 = inlined_call_operand.hbm [shape: f32[16,128], index: 1, kind: input, shape index: {}]   ;;  %s297_s2 = inlined_call_operand.hbm [shape: f32[1,1], index: 2, kind: output, shape index: {}]  }
   0x1   :  { %8 = vsyncpa [#allocation9], 0 }
   0x2   :  { %9 = vsyncpa [#allocation7], 0  ;;  %s239_s9 = smov [#allocation5]   ;;  %s179_s13 = scalar_lea.hbm %s295_s0, 256 }
   0x3   :  { %s15_s10 = sshll.u32 %s239_s9, 4  ;;  %p180_p0 = scmp.ne.s32.totalorder %s295_s0, %s179_s13  ;;  %s16_s10 = int_to_ptr.vmem [resolvable:$true] %s15_s10 }
   0x4   :  { %p183_p1 = scmp.lt.u32.totalorder %s179_s13, %s295_s0 }
   0x6   :  { %p185_p2 = pnand %p183_p1, %p180_p0 }
   0x8   :  { %188 = shalt.err (!%p185_p2)
}
   0x9   :  { %s189_s18 = scalar_lea.vmem %s16_s10, 256  ;;  %p194_p4 = scmp.lt.s32.totalorder %s16_s10, %s16_s10 }
   0xa   :  { %p190_p3 = scmp.ne.s32.totalorder %s16_s10, %s189_s18  ;;  %p195_p5 = scmp.lt.s32.totalorder %s189_s18, %s189_s18 }
   0xc   :  { %p196_p6 = por %p195_p5, %p194_p4 }
   0xe   :  { %p197_p7 = pnand %p196_p6, %p190_p3 }
  0x10   :  { %200 = shalt.err (!%p197_p7)
}
  0x11   :  { %s240_s19 = smov 128   ;;  %s241_s20 = smov 8  }
  0x12   :  { %21 = dma.hbm_to_vmem [thread:$0]  %s295_s0, 256, %s16_s10, [#allocation6], %s240_s19, %s240_s19, %s241_s20  }
  0x13   :  { %s242_s23 = smov [#allocation8]   ;;  %s201_s27 = scalar_lea.hbm %s296_s1, 256 }
  0x14   :  { %s27_s24 = sshll.u32 %s242_s23, 4  ;;  %p202_p8 = scmp.ne.s32.totalorder %s296_s1, %s201_s27  ;;  %s28_s24 = int_to_ptr.vmem [resolvable:$true] %s27_s24 }
  0x15   :  { %p205_p9 = scmp.lt.u32.totalorder %s201_s27, %s296_s1 }
  0x17   :  { %p207_p10 = pnand %p205_p9, %p202_p8 }
  0x19   :  { %210 = shalt.err (!%p207_p10)
}
  0x1a   :  { %s211_s4 = scalar_lea.vmem %s28_s24, 256  ;;  %p216_p12 = scmp.lt.s32.totalorder %s28_s24, %s28_s24 }
  0x1b   :  { %p212_p11 = scmp.ne.s32.totalorder %s28_s24, %s211_s4  ;;  %p217_p13 = scmp.lt.s32.totalorder %s211_s4, %s211_s4 }
  0x1d   :  { %p218_p0 = por %p217_p13, %p216_p12 }
  0x1f   :  { %p219_p1 = pnand %p218_p0, %p212_p11 }
  0x21   :  { %222 = shalt.err (!%p219_p1)
}
  0x22   :  { %33 = dma.hbm_to_vmem [thread:$0]  %s296_s1, 256, %s28_s24, [#allocation9], %s240_s19, %s240_s19, %s241_s20  }
  0x23   :  { %233 = dma.done.wait [#allocation6], 256  }
  0x24   :  { %234 = vsyncadd [#allocation6], 4294967040 }
  0x25   :  { %235 = dma.done.wait [#allocation9], 256  }
  0x26   :  { %236 = vsyncadd [#allocation9], 4294967040  ;;  %v61_v0 = vld [vmem:[#allocation5] sm:$0xff]  ;;  %v62_v1 = vld [vmem:[#allocation5 + $0x8] sm:$0xff]  ;;  %v49_v4 = vlaneseq  ;;  %s223_s17 = scalar_lea.hbm %s297_s2, 16 }
  0x27   :  { %v154_v2 = vmul.f32 -1.442695, %v61_v0  ;;  %v155_v3 = vmul.f32 -1.442695, %v62_v1  ;;  %v77_v16 = vld [vmem:[#allocation8] sm:$0xff]  ;;  %v78_v17 = vld [vmem:[#allocation8 + $0x8] sm:$0xff]  ;;  %p224_p2 = scmp.ne.s32.totalorder %s297_s2, %s223_s17  ;;  %p227_p3 = scmp.lt.u32.totalorder %s223_s17, %s297_s2 }
  0x28   :  { %v50_v5 = vshrl.u32 %v49_v4, 7  ;;  %v53_v9 = vand.u32 127, %v49_v4 }
  0x29   :  { %169 = vpow2.f32 %v154_v2  ;;  %p229_p4 = pnand %p227_p3, %p224_p2 }
  0x2a   :  { %171 = vpow2.f32 %v155_v3  ;;  %v51_v6 = vadd.s32 8, %v50_v5  ;;  %v54_v10 = vmul.u32 128, %v50_v5 }
  0x2c   :  { %v55_v12 = vmul.u32 128, %v51_v6  ;;  %v56_v14 = vadd.s32 %v54_v10, %v53_v9 }
  0x2e   :  { %v57_v15 = vadd.s32 %v55_v12, %v53_v9  ;;  %vm59_vm0 = vcmp.lt.s32.totalorder %v56_v14, 2048 }
  0x2f   :  { %v79_v18 = vsel %vm59_vm0, %v77_v16, 0.0 }
  0x30   :  { %vm60_vm1 = vcmp.lt.s32.totalorder %v57_v15, 2048 }
  0x31   :  { %v80_v20 = vsel %vm60_vm1, %v78_v17, 0.0 }
  0x32   :  { %v88_v28 = vadd.f32 %v80_v20, %v79_v18 }
  0x33   :  { %v170_v7 = vpop.eup %169 }
  0x34   :  { %v172_v8 = vpop.eup %171  ;;  %v69_v11 = vadd.f32 1.0, %v170_v7 }
  0x35   :  { %v70_v13 = vadd.f32 1.0, %v172_v8 }
  0x36   :  { %173 = vrcp.f32 %v69_v11 }
  0x37   :  { %175 = vrcp.f32 %v70_v13 }
  0x40   :  { %v174_v19 = vpop.eup %173 }
  0x41   :  { %v176_v21 = vpop.eup %175  ;;  %v75_v22 = vsel %vm59_vm0, %v174_v19, 0.0 }
  0x42   :  { %v76_v23 = vsel %vm60_vm1, %v176_v21, 0.0  ;;  %v82_v24 = vmul.f32 %v79_v18, %v75_v22 }
  0x43   :  { %v92_v25 = vadd.f32 %v76_v23, %v75_v22  ;;  %v83_v26 = vmul.f32 %v80_v20, %v76_v23 }
  0x45   :  { %119 = vadd.xlane.f32.xlu1 %v92_v25  ;;  %v84_v27 = vadd.f32 %v83_v26, %v82_v24 }
  0x47   :  { %99 = vadd.xlane.f32.xlu0 %v84_v27 }
  0x4b   :  { %109 = vadd.xlane.f32.xlu0 %v88_v28 }
  0xd2   :  { %v120_v29 = vpop.xlane.xlu1 %119 }
  0xd3   :  { %v121_v30 = vrot.slane %v120_v29, 4 }
  0xd4   :  { %v100_v31 = vpop.xlane.xlu0 %99 }
  0xd5   :  { %v122_v32 = vadd.f32 %v121_v30, %v120_v29  ;;  %v101_v33 = vrot.slane %v100_v31, 4 }
  0xd7   :  { %v102_v34 = vadd.f32 %v101_v33, %v100_v31  ;;  %v123_v35 = vrot.slane %v122_v32, 2 }
  0xd8   :  { %v110_v36 = vpop.xlane.xlu0 %109 }
  0xd9   :  { %v103_v37 = vrot.slane %v102_v34, 2  ;;  %v111_v38 = vrot.slane %v110_v36, 4  ;;  %v124_v41 = vadd.f32 %v123_v35, %v122_v32 }
  0xdb   :  { %v112_v39 = vadd.f32 %v111_v38, %v110_v36  ;;  %v104_v40 = vadd.f32 %v103_v37, %v102_v34  ;;  %v125_v46 = vrot.slane %v124_v41, 1 }
  0xdd   :  { %v113_v42 = vrot.slane %v112_v39, 2  ;;  %v105_v43 = vrot.slane %v104_v40, 1  ;;  %v126_v49 = vadd.f32 %v125_v46, %v124_v41 }
  0xdf   :  { %v114_v44 = vadd.f32 %v113_v42, %v112_v39  ;;  %v106_v45 = vadd.f32 %v105_v43, %v104_v40 }
  0xe1   :  { %156 = vpush %v106_v45  ;;  %v115_v47 = vrot.slane %v114_v44, 1 }
  0xe3   :  { %v116_v48 = vadd.f32 %v115_v47, %v114_v44 }
  0xe5   :  { %158 = vpush %v116_v48 }
  0xe6   :  { %160 = vpush %v126_v49 }
 0x112   :  { %s157_s1 = spop %156 }
 0x113   :  { %s128_s10 = smul.f32 2.0, %s157_s1 }
 0x115   :  { %s129_s11 = sadd.f32 1.0, %s128_s10 }
 0x116   :  { %s159_s6 = spop %158 }
 0x117   :  { %s161_s7 = spop %160 }
 0x118   :  { %s130_s8 = sadd.f32 %s161_s7, %s159_s6 }
 0x11a   :  { %s131_s9 = sadd.f32 1.0, %s130_s8 }
 0x11c   :  { %v132_v50 = vstv %s131_s9 }
 0x11d   :  { %177 = vrcp.f32 %v132_v50 }
 0x127   :  { %v178_v51 = vpop.eup %177 }
 0x128   :  { %162 = vpush %v178_v51 }
 0x159   :  { %s163_s12 = spop %162 }
 0x15a   :  { %s135_s13 = smul.f32 %s163_s12, %s129_s11 }
 0x15c   :  { %s136_s14 = ssub.f32 1.0, %s135_s13 }
 0x15e   :  { %138 = sst [smem:[#allocation10]] %s136_s14 }
 0x15f   :  { %232 = shalt.err (!%p229_p4)
}
 0x160   :  { %s243_s22 = smov [#allocation10]  }
 0x161   :  { %146 = dma.smem_to_hbm %s243_s22, 16, %s297_s2, [#allocation7]  }
 0x162   :  { %237 = dma.done.wait [#allocation7], 16  }
 0x163   :  { %238 = vsyncadd [#allocation7], 4294967280 }
 0x164   :  { %150 = sfence }
 0x165   :  { %151 = vsyncpa [#allocation6], 1 }
 0x166   :  { %152 = vsyncpa [#allocation9], 1 }
 0x167   :  { %153 = vsyncpa [#allocation7], 1 }

</bundles_post_ra>
